<compile_context>
chip_gen: v6e
topology: v6e:2x2x1
jax: 0.10.0
libtpu: 0.0.40
codegen_flags: <defaults>
</compile_context>

<pallas_src>
import functools

import jax
import jax.numpy as jnp
from jax import lax
from jax.experimental import pallas as pl
from jax.experimental.pallas import tpu as pltpu


# ---------------------------------------------------------------------------
# Small helpers
# ---------------------------------------------------------------------------
def _round_up(x, m):
    return ((x + m - 1) // m) * m


def _pick_tn(n_pad, cap=512):
    # Largest multiple of 128 that is <= cap and divides n_pad.
    t = (min(cap, n_pad) // 128) * 128
    while n_pad % t:
        t -= 128
    return t


def _vmem_limit_bytes(*buf_bytes):
    # Double-buffered pipeline blocks + 2x headroom, clamped to [16, 32] MiB
    # (within default scoped VMEM on v6e/v7x and physical VMEM everywhere).
    need = 2 * sum(int(b) for b in buf_bytes)
    return int(min(max(2 * need, 16 * 1024 * 1024), 32 * 1024 * 1024))


def prep_linear_params(w_kn, b_n, compute_dtype=jnp.bfloat16):
    """w_kn: [K, N] matmul-layout weight, b_n: [N] -> (padded bf16 W, padded f32 b)."""
    K, N = w_kn.shape
    Kp, Np = _round_up(K, 128), _round_up(N, 128)
    wp = jnp.pad(w_kn.astype(compute_dtype), ((0, Kp - K), (0, Np - N)))
    bp = jnp.pad(b_n.astype(jnp.float32), (0, Np - N)).reshape(1, Np)
    return wp, bp


def pad_rows_cols(x2d, m_pad, k_pad, compute_dtype=jnp.bfloat16):
    M, K = x2d.shape
    return jnp.pad(x2d.astype(compute_dtype), ((0, m_pad - M), (0, k_pad - K)))


# ---------------------------------------------------------------------------
# Kernels
# ---------------------------------------------------------------------------
def _linear_kernel(x_ref, w_ref, b_ref, o_ref, *, apply_relu):
    # x: [tm, K_pad] bf16, w: [K_pad, tn] bf16, b: [1, tn] f32
    acc = jnp.dot(x_ref[...], w_ref[...], preferred_element_type=jnp.float32)
    acc = acc + b_ref[...]
    if apply_relu:
        acc = jnp.maximum(acc, 0.0)
    o_ref[...] = acc.astype(o_ref.dtype)


def _mlp_kernel(x_ref, w1_ref, b1_ref, w2_ref, b2_ref, o_ref, h_ref):
    # Fused  relu(relu(x @ W1 + b1) @ W2 + b2); hidden stays in VMEM scratch.
    h = jnp.dot(x_ref[...], w1_ref[...], preferred_element_type=jnp.float32)
    h_ref[...] = jnp.maximum(h + b1_ref[...], 0.0).astype(h_ref.dtype)
    y = jnp.dot(h_ref[...], w2_ref[...], preferred_element_type=jnp.float32)
    o_ref[...] = jnp.maximum(y + b2_ref[...], 0.0).astype(o_ref.dtype)


# ---------------------------------------------------------------------------
# pallas_call wrappers (operate on pre-padded operands, return padded outputs)
# ---------------------------------------------------------------------------
def pallas_linear_padded(xp, wp, bp, *, apply_relu=False, out_dtype=jnp.bfloat16):
    """xp:[M_pad,K_pad] bf16, wp:[K_pad,N_pad] bf16, bp:[1,N_pad] f32."""
    M_pad, K_pad = xp.shape
    K2, N_pad = wp.shape
    assert K_pad == K2 and bp.shape == (1, N_pad)
    assert M_pad % 8 == 0 and K_pad % 128 == 0 and N_pad % 128 == 0

    tm = min(512, M_pad)
    assert M_pad % tm == 0
    tn = _pick_tn(N_pad)
    m_blocks, n_blocks = M_pad // tm, N_pad // tn

    in_isz = jnp.dtype(xp.dtype).itemsize
    out_isz = jnp.dtype(out_dtype).itemsize
    cost = pl.CostEstimate(
        flops=2 * M_pad * K_pad * N_pad,
        transcendentals=0,
        bytes_accessed=(M_pad * K_pad + K_pad * N_pad) * in_isz
        + N_pad * 4 + M_pad * N_pad * out_isz,
    )
    vmem = _vmem_limit_bytes(tm * K_pad * in_isz, K_pad * tn * in_isz,
                             tn * 4, tm * tn * out_isz)

    if n_blocks == 1:
        # 1-D grid over M: the parallel (megacore-shardable) axis is the one
        # that actually has >1 block; weight/bias blocks resident all along.
        grid = (m_blocks,)
        in_specs = [
            pl.BlockSpec((tm, K_pad), lambda i: (i, 0)),
            pl.BlockSpec((K_pad, tn), lambda i: (0, 0)),
            pl.BlockSpec((1, tn), lambda i: (0, 0)),
        ]
        out_specs = pl.BlockSpec((tm, tn), lambda i: (i, 0))
        dims = ("parallel",)
    else:
        # N outermost -> weight/bias blocks DMA'd once per N-block.
        grid = (n_blocks, m_blocks)
        in_specs = [
            pl.BlockSpec((tm, K_pad), lambda j, i: (i, 0)),
            pl.BlockSpec((K_pad, tn), lambda j, i: (0, j)),
            pl.BlockSpec((1, tn), lambda j, i: (0, j)),
        ]
        out_specs = pl.BlockSpec((tm, tn), lambda j, i: (i, j))
        dims = ("parallel", "parallel")

    return pl.pallas_call(
        functools.partial(_linear_kernel, apply_relu=apply_relu),
        out_shape=jax.ShapeDtypeStruct((M_pad, N_pad), out_dtype),
        grid=grid,
        in_specs=in_specs,
        out_specs=out_specs,
        compiler_params=pltpu.CompilerParams(
            dimension_semantics=dims, vmem_limit_bytes=vmem),
        cost_estimate=cost,
    )(xp, wp, bp)


def pallas_mlp_padded(xp, w1p, b1p, w2p, b2p, *, out_dtype=jnp.bfloat16):
    """Fused two-layer MLP (Linear+ReLU twice) on pre-padded operands."""
    M_pad, K_pad = xp.shape
    K2, H_pad = w1p.shape
    H2, N_pad = w2p.shape
    assert K_pad == K2 and H_pad == H2
    assert b1p.shape == (1, H_pad) and b2p.shape == (1, N_pad)

    tm = min(512, M_pad)
    assert M_pad % tm == 0
    m_blocks = M_pad // tm

    in_isz = jnp.dtype(xp.dtype).itemsize
    out_isz = jnp.dtype(out_dtype).itemsize
    cost = pl.CostEstimate(
        flops=2 * M_pad * (K_pad * H_pad + H_pad * N_pad),
        transcendentals=0,
        bytes_accessed=(M_pad * K_pad + K_pad * H_pad + H_pad * N_pad) * in_isz
        + (H_pad + N_pad) * 4 + M_pad * N_pad * out_isz,
    )
    vmem = _vmem_limit_bytes(tm * K_pad * in_isz, K_pad * H_pad * in_isz,
                             H_pad * N_pad * in_isz, (H_pad + N_pad) * 4,
                             tm * N_pad * out_isz, tm * H_pad * 2)

    return pl.pallas_call(
        _mlp_kernel,
        out_shape=jax.ShapeDtypeStruct((M_pad, N_pad), out_dtype),
        grid=(m_blocks,),
        in_specs=[
            pl.BlockSpec((tm, K_pad), lambda i: (i, 0)),
            pl.BlockSpec((K_pad, H_pad), lambda i: (0, 0)),
            pl.BlockSpec((1, H_pad), lambda i: (0, 0)),
            pl.BlockSpec((H_pad, N_pad), lambda i: (0, 0)),
            pl.BlockSpec((1, N_pad), lambda i: (0, 0)),
        ],
        out_specs=pl.BlockSpec((tm, N_pad), lambda i: (i, 0)),
        scratch_shapes=[pltpu.VMEM((tm, H_pad), jnp.bfloat16)],
        compiler_params=pltpu.CompilerParams(
            dimension_semantics=("parallel",), vmem_limit_bytes=vmem),
        cost_estimate=cost,
    )(xp, w1p, b1p, w2p, b2p)


# ---------------------------------------------------------------------------
# Module pieces (padded bf16 activations carried end-to-end)
# ---------------------------------------------------------------------------
def patch_embedding_padded(x, wp, bp, patch_size, m_pad, out_dtype=jnp.bfloat16):
    """x:[B,C,H,W] NCHW -> padded tokens [m_pad, E_pad] (bf16).
    wp/bp = prep_linear_params(conv_weight.reshape(E, C*P*P).T, conv_bias)."""
    B, C, H, W = x.shape
    P = patch_size
    gh, gw = H // P, W // P
    K = C * P * P
    # Cast to bf16 BEFORE the 6-D patch transpose (halves its HBM bytes).
    # TODO(synk): fuse this gather into the kernel input DMA instead.
    xb = x.astype(jnp.bfloat16)
    xb = xb.reshape(B, C, gh, P, gw, P)
    xb = jnp.transpose(xb, (0, 2, 4, 1, 3, 5)).reshape(B * gh * gw, K)
    xp = pad_rows_cols(xb, m_pad, wp.shape[0])
    return pallas_linear_padded(xp, wp, bp, apply_relu=False, out_dtype=out_dtype)


def patch_unembedding_padded(tok_pad, wp, bp, patch_size, img_size, batch, in_chans):
    """tok_pad:[m_pad, E_pad] bf16 -> image [B, C, H, W] f32 (ConvTranspose2d)."""
    P = patch_size
    g = img_size // P
    M = batch * g * g
    ncols = in_chans * P * P
    y = pallas_linear_padded(tok_pad, wp, bp, apply_relu=False,
                             out_dtype=jnp.float32)
    y = y[:M, :ncols]                       # the only slice in the whole chain
    y = y.reshape(batch, g, g, in_chans, P, P)
    y = jnp.transpose(y, (0, 3, 1, 4, 2, 5)).reshape(batch, in_chans,
                                                     img_size, img_size)
    return y


def awgn_channel_padded(x_pad, m_valid, n_valid, key, snr=12.0):
    """AWGN on a padded bf16 tensor; signal power measured on the valid region
    only so zero pad rows/cols do not bias the noise power estimate."""
    # TODO(synk): fuse into the encoder-MLP epilogue with pltpu.prng_random_bits.
    snr_factor = 10.0 ** (snr / 10.0)
    xv = x_pad[:m_valid, :n_valid].astype(jnp.float32)
    n_power = jnp.mean(xv * xv) / snr_factor
    noise = jax.random.normal(key, x_pad.shape, jnp.float32) * jnp.sqrt(n_power)
    return (x_pad.astype(jnp.float32) + noise).astype(x_pad.dtype)


# TODO(synk): the 3-layer nn.TransformerEncoder / nn.TransformerDecoder stacks
# (multi-head attention + LayerNorm + FFN) are not translated to Pallas here;
# they are passed through as identity below.


# ---------------------------------------------------------------------------
# Demo / correctness checks
# ---------------------------------------------------------------------------
if __name__ == "__main__":
    img_size, patch_size, in_chans, embed_dim, Kdim = 16, 4, 4, 32, 8
    batch, snr = 2, 12.0
    g = img_size // patch_size
    num_patches = g * g
    M = batch * num_patches
    M_pad = _round_up(M, min(512, _round_up(M, 8)))
    TwoK = 2 * Kdim

    key = jax.random.PRNGKey(0)
    ks = jax.random.split(key, 12)

    x = jax.random.normal(ks[0], (batch, in_chans, img_size, img_size),
                          jnp.float32)

    # Parameters in PyTorch layouts.
    w_pe = jax.random.normal(ks[1], (embed_dim, in_chans, patch_size,
                                     patch_size), jnp.float32) * 0.02
    b_pe = jax.random.normal(ks[2], (embed_dim,), jnp.float32) * 0.02
    w_e1 = jax.random.normal(ks[3], (256, embed_dim), jnp.float32) * 0.02
    b_e1 = jax.random.normal(ks[4], (256,), jnp.float32) * 0.02
    w_e2 = jax.random.normal(ks[5], (TwoK, 256), jnp.float32) * 0.02
    b_e2 = jax.random.normal(ks[6], (TwoK,), jnp.float32) * 0.02
    w_d1 = jax.random.normal(ks[7], (256, TwoK), jnp.float32) * 0.02
    b_d1 = jax.random.normal(ks[8], (256,), jnp.float32) * 0.02
    w_d2 = jax.random.normal(ks[9], (embed_dim, 256), jnp.float32) * 0.02
    b_d2 = jax.random.normal(ks[10], (embed_dim,), jnp.float32) * 0.02
    w_pu = jax.random.normal(ks[11], (embed_dim, in_chans, patch_size,
                                      patch_size), jnp.float32) * 0.02
    b_pu = jax.random.normal(jax.random.PRNGKey(42), (in_chans,),
                             jnp.float32) * 0.02

    # ---- pad / cast all parameters ONCE (outside the kernels) ----
    wp_pe, bp_pe = prep_linear_params(w_pe.reshape(embed_dim, -1).T, b_pe)
    wp_e1, bp_e1 = prep_linear_params(w_e1.T, b_e1)
    wp_e2, bp_e2 = prep_linear_params(w_e2.T, b_e2)
    wp_d1, bp_d1 = prep_linear_params(w_d1.T, b_d1)
    wp_d2, bp_d2 = prep_linear_params(w_d2.T, b_d2)
    wp_pu, bp_pu = prep_linear_params(
        w_pu.reshape(embed_dim, -1), jnp.repeat(b_pu, patch_size * patch_size))

    # ---- forward pass (padded bf16 activations end-to-end) ----
    emb_pad = patch_embedding_padded(x, wp_pe, bp_pe, patch_size, M_pad)
    code_pad = emb_pad  # TODO(synk): nn.TransformerEncoder (3 layers) not translated
    sent_pad = pallas_mlp_padded(code_pad, wp_e1, bp_e1, wp_e2, bp_e2)
    noisy_pad = awgn_channel_padded(sent_pad, M, TwoK, jax.random.PRNGKey(1), snr)
    r_pad = pallas_mlp_padded(noisy_pad, wp_d1, bp_d1, wp_d2, bp_d2)
    # TODO(synk): nn.TransformerDecoder (3 layers) not translated
    recon = patch_unembedding_padded(r_pad, wp_pu, bp_pu, patch_size, img_size,
                                     batch, in_chans)
    recon = jax.block_until_ready(recon)
    assert recon.shape == x.shape

    # ---- reference checks (stage by stage, bf16-matched inputs) ----
    f32 = jnp.float32
    b2f = lambda a: a.astype(jnp.bfloat16).astype(f32)

    # 1) patch embedding vs Conv2d(kernel=P, stride=P)
    emb = emb_pad[:M, :embed_dim].astype(f32)
    ref = lax.conv_general_dilated(
        b2f(x), b2f(w_pe), window_strides=(patch_size, patch_size),
        padding="VALID", dimension_numbers=("NCHW", "OIHW", "NCHW"))
    ref = ref + b_pe[None, :, None, None]
    ref = ref.reshape(batch, embed_dim, num_patches).transpose(0, 2, 1)
    ref = ref.reshape(M, embed_dim)
    assert jnp.allclose(emb, ref, atol=3e-3, rtol=3e-3)

    # 2) fused encoder MLP (Linear+ReLU twice, bf16 hidden)
    ref_h = jnp.maximum(emb @ b2f(w_e1).T + b_e1, 0.0)
    ref_sent = jnp.maximum(b2f(ref_h) @ b2f(w_e2).T + b_e2, 0.0)
    sent = sent_pad[:M, :TwoK].astype(f32)
    assert jnp.allclose(sent, ref_sent, atol=3e-3, rtol=3e-3)

    # 3) fused decoder MLP on the actual channel output
    noisy = noisy_pad[:M, :TwoK].astype(f32)
    ref_r1 = jnp.maximum(noisy @ b2f(w_d1).T + b_d1, 0.0)
    ref_r = jnp.maximum(b2f(ref_r1) @ b2f(w_d2).T + b_d2, 0.0)
    r = r_pad[:M, :embed_dim].astype(f32)
    assert jnp.allclose(r, ref_r, atol=3e-3, rtol=3e-3)

    # 4) patch unembedding vs ConvTranspose2d(kernel=P, stride=P)
    ref_cols = r @ b2f(w_pu).reshape(embed_dim, -1)
    ref_cols = ref_cols + jnp.repeat(b_pu, patch_size * patch_size)[None, :]
    ref_rec = ref_cols.reshape(batch, g, g, in_chans, patch_size, patch_size)
    ref_rec = jnp.transpose(ref_rec, (0, 3, 1, 4, 2, 5)).reshape(
        batch, in_chans, img_size, img_size)
    assert jnp.allclose(recon, ref_rec, atol=3e-3, rtol=3e-3)

    print("KERNEL_OK")
</pallas_src>

<mosaic_0001>
module attributes {stable_mosaic.version = 11 : i64} {
  func.func @_linear_kernel(%arg0: i32, %arg1: memref<32x128xbf16, #tpu.memory_space<vmem>>, %arg2: memref<128x128xbf16, #tpu.memory_space<vmem>>, %arg3: memref<1x128xf32, #tpu.memory_space<vmem>>, %arg4: memref<32x128xbf16, #tpu.memory_space<vmem>>) attributes {dimension_semantics = [#tpu.dimension_semantics<parallel>], iteration_bounds = array<i64: 1>, scalar_prefetch = 0 : i64, scratch_operands = 0 : i64, tpu.core_type = #tpu.core_type<tc>, window_params = [{transform_indices = @transform_0, window_bounds = array<i64: 32, 128>}, {pipeline_mode = #tpu.pipeline_mode<synchronous>, transform_indices = @transform_1, window_bounds = array<i64: 128, 128>}, {pipeline_mode = #tpu.pipeline_mode<synchronous>, transform_indices = @transform_2, window_bounds = array<i64: 1, 128>}, {transform_indices = @transform_3, window_bounds = array<i64: 32, 128>}]} {
    %c0 = arith.constant 0 : index
    %c0_0 = arith.constant 0 : index
    %0 = vector.load %arg1[%c0, %c0_0] : memref<32x128xbf16, #tpu.memory_space<vmem>>, vector<32x128xbf16>
    %c0_1 = arith.constant 0 : index
    %c0_2 = arith.constant 0 : index
    %1 = vector.load %arg2[%c0_1, %c0_2] : memref<128x128xbf16, #tpu.memory_space<vmem>>, vector<128x128xbf16>
    %cst = arith.constant dense<0.000000e+00> : vector<32x128xf32>
    %2 = tpu.matmul %0, %1, %cst {dimension_numbers = #tpu.dot_dimension_numbers<[1], [0], [0], [1], [0, 0, 1, 1], [], []>} : vector<32x128xbf16>, vector<128x128xbf16>, vector<32x128xf32> -> vector<32x128xf32>
    %c0_3 = arith.constant 0 : index
    %c0_4 = arith.constant 0 : index
    %3 = vector.load %arg3[%c0_3, %c0_4] : memref<1x128xf32, #tpu.memory_space<vmem>>, vector<1x128xf32>
    %4 = vector.broadcast %3 : vector<1x128xf32> to vector<32x128xf32>
    %5 = arith.addf %2, %4 : vector<32x128xf32>
    %6 = arith.truncf %5 : vector<32x128xf32> to vector<32x128xbf16>
    %c0_5 = arith.constant 0 : index
    %c0_6 = arith.constant 0 : index
    %7 = vector.load %arg4[%c0_5, %c0_6] : memref<32x128xbf16, #tpu.memory_space<vmem>>, vector<32x128xbf16>
    tpu.vector_store %arg4[%c0_5, %c0_6], %6 {strides = array<i32>} : memref<32x128xbf16, #tpu.memory_space<vmem>>, vector<32x128xbf16>,
    return
  }
  func.func @transform_0(%arg0: i32) -> (i32, i32) {
    %c0_i32 = arith.constant 0 : i32
    %c0_i32_0 = arith.constant 0 : i32
    return %arg0, %c0_i32 : i32, i32
  }
  func.func @transform_1(%arg0: i32) -> (i32, i32) {
    %c0_i32 = arith.constant 0 : i32
    %c0_i32_0 = arith.constant 0 : i32
    %c0_i32_1 = arith.constant 0 : i32
    return %c0_i32, %c0_i32_0 : i32, i32
  }
  func.func @transform_2(%arg0: i32) -> (i32, i32) {
    %c0_i32 = arith.constant 0 : i32
    %c0_i32_0 = arith.constant 0 : i32
    %c0_i32_1 = arith.constant 0 : i32
    return %c0_i32, %c0_i32_0 : i32, i32
  }
  func.func @transform_3(%arg0: i32) -> (i32, i32) {
    %c0_i32 = arith.constant 0 : i32
    %c0_i32_0 = arith.constant 0 : i32
    return %arg0, %c0_i32 : i32, i32
  }
}

</mosaic_0001>

<bundles_post_ra>
// kernel: tpu_custom_call.1
= control target key start
LH: loop header
LB: loop body
LE: loop exit
PB: predicated region body
PF: predicated region fallthrough
CT: control target
= control target key end

     0   :  { %8 = vsyncpa [#allocation3], 0  ;;  %s405_s0 = inlined_call_operand.hbm [shape: bf16[32,128], index: 0, kind: input, shape index: {}]   ;;  %s406_s1 = inlined_call_operand.hbm [shape: bf16[128,128], index: 1, kind: input, shape index: {}]   ;;  %s407_s2 = inlined_call_operand.vmem [shape: f32[1,128], index: 2, kind: input, shape index: {}]   ;;  %s408_s3 = inlined_call_operand.hbm [shape: bf16[32,128], index: 3, kind: output, shape index: {}]  }
   0x1   :  { %9 = vsyncpa [#allocation6], 0 }
   0x2   :  { %10 = vsyncpa [#allocation4], 0  ;;  %s359_s12 = smov [#allocation2]  }
   0x3   :  { %s16_s13 = sshll.u32 %s359_s12, 4  ;;  %s17_s13 = int_to_ptr.vmem [resolvable:$true] %s16_s13 }
   0x4   :  { %s301_s14 = scalar_lea.vmem %s17_s13, 256  ;;  %p306_p1 = scmp.lt.s32.totalorder %s17_s13, %s17_s13 }
   0x5   :  { %p302_p0 = scmp.ne.s32.totalorder %s17_s13, %s301_s14  ;;  %p307_p2 = scmp.lt.s32.totalorder %s301_s14, %s301_s14 }
   0x7   :  { %p308_p3 = por %p307_p2, %p306_p1 }
   0x9   :  { %p309_p4 = pnand %p308_p3, %p302_p0 }
   0xb   :  { %312 = shalt.err (!%p309_p4)
}
   0xc   :  { %s360_s15 = smov 64   ;;  %s361_s16 = smov 4  }
   0xd   :  { %22 = dma.hbm_to_vmem [thread:$0]  %s405_s0, 256, %s17_s13, [#allocation3], %s360_s15, %s360_s15, %s361_s16  }
   0xe   :  { %s362_s19 = smov [#allocation5]  }
   0xf   :  { %s28_s20 = sshll.u32 %s362_s19, 4  ;;  %s29_s20 = int_to_ptr.vmem [resolvable:$true] %s28_s20 }
  0x10   :  { %s321_s21 = scalar_lea.vmem %s29_s20, 1024  ;;  %p326_p6 = scmp.lt.s32.totalorder %s29_s20, %s29_s20 }
  0x11   :  { %p322_p5 = scmp.ne.s32.totalorder %s29_s20, %s321_s21  ;;  %p327_p7 = scmp.lt.s32.totalorder %s321_s21, %s321_s21 }
  0x13   :  { %p328_p8 = por %p327_p7, %p326_p6 }
  0x15   :  { %p329_p9 = pnand %p328_p8, %p322_p5 }
  0x17   :  { %332 = shalt.err (!%p329_p9)
}
  0x18   :  { %34 = dma.hbm_to_vmem [thread:$0]  %s406_s1, 1024, %s29_s20, [#allocation6], %s360_s15, %s360_s15, %s361_s16  }
  0x19   :  { %353 = dma.done.wait [#allocation3], 256  }
  0x1a   :  { %354 = vsyncadd [#allocation3], 4294967040 }
  0x1b   :  { %355 = dma.done.wait [#allocation6], 1024  }
  0x1c   :  { %356 = vsyncadd [#allocation6], 4294966272  ;;  %v283_v0 = vld [vmem:[#allocation5 + $0x38] sm:$0xff]   ;;  %v284_v1 = vld [vmem:[#allocation5 + $0x30] sm:$0xff]   ;;  %s363_s24 = smov [#allocation7]  }
  0x1d   :  { %258 = vmatprep.subr.bf16.mxu0 %v283_v0  ;;  %v285_v2 = vld [vmem:[#allocation5 + $0x28] sm:$0xff]   ;;  %v286_v3 = vld [vmem:[#allocation5 + $0x20] sm:$0xff]   ;;  %v291_v4 = vld [vmem:[#allocation2] sm:$0xff]   ;;  %s205_s25 = sshll.u32 %s363_s24, 4  ;;  %s206_s25 = int_to_ptr.vmem [resolvable:$true] %s205_s25 }
  0x1e   :  { %259 = vmatpush3.bf16.msra.mxu0 %v283_v0  ;;  %274 = vmatprep.mubr.bf16.mxu0 %v291_v4  ;;  %v287_v5 = vld [vmem:[#allocation5 + $0x18] sm:$0xff]   ;;  %v288_v6 = vld [vmem:[#allocation5 + $0x10] sm:$0xff]   ;;  %v289_v7 = vld [vmem:[#allocation5 + $0x8] sm:$0xff]   ;;  %s333_s26 = scalar_lea.vmem %s206_s25, 256  ;;  %p338_p11 = scmp.lt.s32.totalorder %s206_s25, %s206_s25 }
  0x1f   :  { %260 = vmatprep.subr.bf16.mxu0 %v284_v1  ;;  %v290_v8 = vld [vmem:[#allocation5] sm:$0xff]   ;;  %v292_v9 = vld [vmem:[#allocation2 + $0x8] sm:$0xff]   ;;  %v218_v11 = vld [vmem:[%s407_s2] ss:$0 sm:$0xff]  ;;  %p334_p10 = scmp.ne.s32.totalorder %s206_s25, %s333_s26  ;;  %p339_p12 = scmp.lt.s32.totalorder %s333_s26, %s333_s26 }
  0x21   :  { %p340_p13 = por %p339_p12, %p338_p11 }
  0x22   :  { %261 = vmatpush3.bf16.msra.mxu0 %v284_v1 }
  0x23   :  { %262 = vmatprep.subr.bf16.mxu0 %v285_v2  ;;  %p341_p0 = pnand %p340_p13, %p334_p10 }
  0x26   :  { %263 = vmatpush3.bf16.msra.mxu0 %v285_v2 }
  0x27   :  { %264 = vmatprep.subr.bf16.mxu0 %v286_v3 }
  0x2a   :  { %265 = vmatpush3.bf16.msra.mxu0 %v286_v3 }
  0x2b   :  { %266 = vmatprep.subr.bf16.mxu0 %v287_v5 }
  0x2e   :  { %267 = vmatpush3.bf16.msra.mxu0 %v287_v5 }
  0x2f   :  { %268 = vmatprep.subr.bf16.mxu0 %v288_v6 }
  0x32   :  { %269 = vmatpush3.bf16.msra.mxu0 %v288_v6 }
  0x33   :  { %270 = vmatprep.subr.bf16.mxu0 %v289_v7 }
  0x36   :  { %271 = vmatpush3.bf16.msra.mxu0 %v289_v7 }
  0x37   :  { %272 = vmatprep.subr.bf16.mxu0 %v290_v8 }
  0x3a   :  { %273 = vmatpush3.bf16.msra.mxu0 %v290_v8 }
  0x3d   :  { %275 = vmatmul.mubr.bf16.vlgmr.msra.gmra.mxu0 %v292_v9 }
  0xfd   :  { %v276_v10 = vpop.f32.mrf.mxu0 }
  0xfe   :  { %v174_v14 = vadd.f32 %v276_v10, %v218_v11 }
  0xff   :  { %v165_v12 = vpop.f32.mrf.mxu0 }
 0x100   :  { %v166_v17 = vadd.f32 %v218_v11, %v165_v12 }
 0x101   :  { %v277_v13 = vpop.f32.mrf.mxu0 }
 0x102   :  { %v177_v15 = vadd.f32 %v277_v13, %v218_v11 }
 0x103   :  { %v168_v16 = vpop.f32.mrf.mxu0 }
 0x104   :  { %v245_v18 = vpack.c.bf16 %v177_v15, %v174_v14  ;;  %v169_v19 = vadd.f32 %v218_v11, %v168_v16 }
 0x106   :  { %247 = vst [vmem:[#allocation7 + $0x8] sm:$0xff] %v245_v18   ;;  %v240_v20 = vpack.c.bf16 %v169_v19, %v166_v17 }
 0x108   :  { %241 = vst [vmem:[#allocation7] sm:$0xff] %v240_v20  }
 0x109   :  { %344 = shalt.err (!%p341_p0)
}
 0x10a   :  { %211 = dma.vmem_to_hbm [thread:$0]  %s206_s25, 256, %s408_s3, [#allocation4], %s360_s15, %s360_s15, %s361_s16  }
 0x10b   :  { %357 = dma.done.wait [#allocation4], 256  }
 0x10c   :  { %358 = vsyncadd [#allocation4], 4294967040 }
 0x10d   :  { %215 = vsyncpa [#allocation3], 1 }
 0x10e   :  { %216 = vsyncpa [#allocation6], 1 }
 0x10f   :  { %217 = vsyncpa [#allocation4], 1 }

</bundles_post_ra>
